<compile_context>
chip_gen: v7x
topology: tpu7x:2x2x1
jax: 0.10.0
libtpu: 0.0.40
codegen_flags: <defaults>
</compile_context>

<pallas_src>
import functools

import jax
import jax.numpy as jnp
from jax.experimental import pallas as pl
from jax.experimental.pallas import tpu as pltpu


def _decoder_gru_kernel(B, T, I, H, H2, O,
                        x_ref, h0_ref, gw_ref, fw_ref, b_ref,
                        out_ref, hn_ref):
    """Single invocation, whole working set resident in VMEM.

    x_ref  : (B*T, I)    f32 inputs, row index = b*T + t (batch-first flatten)
    h0_ref : (B, H)      f32 initial hidden state
    gw_ref : (H+I, 3H)   bf16  [W_hh^T ; W_ih^T]
    fw_ref : (H+H2, Cf)  bf16  [W1^T ; W2^T(col padded)]
    b_ref  : (4, 3H)     f32   rows: [bg(r,z folded | b_in), b_hn, b1, b2] (lane padded)
    out_ref: (B*T, O)    f32 per-step decoder outputs (single writeback)
    hn_ref : (B, H)      f32 final hidden state (single writeback)
    """
    # ---- unpack packed parameter slabs (static slices, one-time) ------------
    whh = gw_ref[0:H, :]                       # (H, 3H)  bf16
    wih = gw_ref[H:H + I, :]                   # (I, 3H)  bf16
    bg = b_ref[0:1, :]                         # (1, 3H)  b_ih+b_hh for r,z | b_in
    bhn = b_ref[1:2, 0:H]                      # (1, H)   b_hn (gated by r)

    # ---- hoisted input projection for all T steps: ONE bf16 MXU matmul ------
    gi_all = jnp.dot(x_ref[...].astype(jnp.bfloat16), wih,
                     preferred_element_type=jnp.float32) + bg   # (B*T, 3H) f32

    # Pre-gather per-step gate inputs (rows b*T + t); off the serial path.
    gi_steps = [
        jnp.concatenate(
            [gi_all[b * T + t:b * T + t + 1, :] for b in range(B)], axis=0)
        for t in range(T)                                        # each (B, 3H)
    ]

    # ---- recurrence: only h @ W_hh^T on the serial critical path ------------
    h = h0_ref[...]                            # (B, H) f32
    hs = []
    for t in range(T):                         # static T -> fully unrolled
        gh = jnp.dot(h.astype(jnp.bfloat16), whh,
                     preferred_element_type=jnp.float32)         # (B, 3H)
        gi_t = gi_steps[t]
        r = jax.nn.sigmoid(gi_t[:, 0:H] + gh[:, 0:H])
        z = jax.nn.sigmoid(gi_t[:, H:2 * H] + gh[:, H:2 * H])
        n = jnp.tanh(gi_t[:, 2 * H:] + r * (gh[:, 2 * H:] + bhn))
        h = (1.0 - z) * n + z * h
        hs.append(h)                           # stays live in vregs

    hn_ref[...] = h                            # final hidden state, stored once

    # ---- gather all h_t into a (B*T, H) register value (batch-first rows) ---
    hs_all = jnp.concatenate(
        [hs[t][b:b + 1, :] for b in range(B) for t in range(T)], axis=0)

    # ---- fc1 -> LeakyReLU(0.01) -> fc2 on all T steps at once ---------------
    # (Dropout p=0.0 is never applied in the PyTorch forward.)
    w1 = fw_ref[0:H, 0:H2]                     # (H, H2) bf16
    w2 = fw_ref[H:H + H2, 0:O]                 # (H2, O) bf16
    b1 = b_ref[2:3, 0:H2]                      # (1, H2) f32
    b2 = b_ref[3:4, 0:O]                       # (1, O)  f32
    y = jnp.dot(hs_all.astype(jnp.bfloat16), w1,
                preferred_element_type=jnp.float32) + b1
    y = jnp.where(y > 0, y, 0.01 * y)
    o = jnp.dot(y.astype(jnp.bfloat16), w2,
                preferred_element_type=jnp.float32) + b2
    out_ref[...] = o.astype(out_ref.dtype)     # single dense writeback


def prepare_decoder_params(params):
    """One-time packing of DecoderGRU parameters into 3 DMA slabs (hoisted
    out of the forward path so the wrapper is a pure pallas_call)."""
    I = params["w_ih"].shape[1]
    H = params["w_hh"].shape[1]
    H2 = params["w1"].shape[0]
    O = params["w2"].shape[0]

    # GRU weights: [W_hh^T ; W_ih^T] along rows, bf16, shape (H+I, 3H).
    gru_w = jnp.concatenate(
        [params["w_hh"].T.astype(jnp.float32),
         params["w_ih"].T.astype(jnp.float32)], axis=0).astype(jnp.bfloat16)

    # FC weights: [W1^T ; W2^T] along rows (columns padded to a common width),
    # bf16, shape (H+H2, max(H2, O)).
    fc_cols = max(H2, O)
    w1_t = jnp.pad(params["w1"].T.astype(jnp.float32),
                   ((0, 0), (0, fc_cols - H2)))
    w2_t = jnp.pad(params["w2"].T.astype(jnp.float32),
                   ((0, 0), (0, fc_cols - O)))
    fc_w = jnp.concatenate([w1_t, w2_t], axis=0).astype(jnp.bfloat16)

    # Biases: single f32 slab (4, 3H).  Row 0 folds b_ih+b_hh for the r/z
    # gates and keeps b_in; row 1 is b_hn (it is multiplied by r inside the
    # loop so it cannot be folded); rows 2/3 are the fc biases (lane padded).
    b_ih = params["b_ih"].astype(jnp.float32)
    b_hh = params["b_hh"].astype(jnp.float32)
    bg = jnp.concatenate([b_ih[:2 * H] + b_hh[:2 * H], b_ih[2 * H:]])

    def _row(v):
        v = v.astype(jnp.float32)
        return jnp.pad(v, (0, 3 * H - v.shape[0]))[None, :]

    bias = jnp.concatenate(
        [_row(bg), _row(b_hh[2 * H:]), _row(params["b1"]), _row(params["b2"])],
        axis=0)

    return {"gru_w": gru_w, "fc_w": fc_w, "bias": bias, "dims": (I, H, H2, O)}


def decoder_gru_forward(Xp, prepared, hidden_states=None):
    """Xp: (B, T, I) f32, batch_first.  Returns (output (B,T,O), hidden (1,B,H))."""
    I, H, H2, O = prepared["dims"]
    B, T, I_in = Xp.shape
    assert I_in == I

    if hidden_states is None:
        hidden_states = jnp.zeros((1, B, H), dtype=jnp.float32)
    h0 = hidden_states[0].astype(jnp.float32)                  # (B, H)
    x2 = Xp.reshape(B * T, I).astype(jnp.float32)              # free reshape

    vmem = functools.partial(pl.BlockSpec, memory_space=pltpu.MemorySpace.VMEM)

    out_flat, hn = pl.pallas_call(
        functools.partial(_decoder_gru_kernel, B, T, I, H, H2, O),
        out_shape=(jax.ShapeDtypeStruct((B * T, O), jnp.float32),
                   jax.ShapeDtypeStruct((B, H), jnp.float32)),
        in_specs=[vmem(), vmem(), vmem(), vmem(), vmem()],
        out_specs=(vmem(), vmem()),
    )(x2, h0, prepared["gru_w"], prepared["fc_w"], prepared["bias"])

    output = out_flat.reshape(B, T, O)                         # free reshape
    return output, hn[None]                                    # (B,T,O), (1,B,H)


def _reference(Xp, params, h0):
    """Pure-JAX reference with PyTorch GRU / Linear semantics (exact f32)."""
    H = params["w_hh"].shape[1]
    hi = jax.lax.Precision.HIGHEST

    def step(h, x_t):
        gi = jnp.dot(x_t, params["w_ih"].T, precision=hi) + params["b_ih"]
        gh = jnp.dot(h, params["w_hh"].T, precision=hi) + params["b_hh"]
        r = jax.nn.sigmoid(gi[:, :H] + gh[:, :H])
        z = jax.nn.sigmoid(gi[:, H:2 * H] + gh[:, H:2 * H])
        n = jnp.tanh(gi[:, 2 * H:] + r * gh[:, 2 * H:])
        h = (1.0 - z) * n + z * h
        return h, h

    xs = jnp.transpose(Xp, (1, 0, 2))                          # (T, B, I)
    hT, hs = jax.lax.scan(step, h0, xs)
    hs = jnp.transpose(hs, (1, 0, 2))                          # (B, T, H)
    y = jnp.dot(hs, params["w1"].T, precision=hi) + params["b1"]
    y = jnp.where(y > 0, y, 0.01 * y)
    o = jnp.dot(y, params["w2"].T, precision=hi) + params["b2"]
    return o, hT[None]


if __name__ == "__main__":
    OUTPUT_FEATURES_NUM = 8     # stand-in for util.OUTPUT_FEATURES_NUM
    HIDDEN = 32                 # hidden_dimension; bidirectional=False -> H = 32
    B, T = 2, 8
    H = HIDDEN

    key = jax.random.PRNGKey(0)
    ks = jax.random.split(key, 9)
    k = 1.0 / (H ** 0.5)
    u = lambda kk, shp: jax.random.uniform(kk, shp, jnp.float32, -k, k)

    # Deterministic synthetic parameters with the same shapes as the PyTorch module.
    params = {
        "w_ih": u(ks[0], (3 * H, OUTPUT_FEATURES_NUM)),   # gru weight_ih_l0
        "w_hh": u(ks[1], (3 * H, H)),                     # gru weight_hh_l0
        "b_ih": u(ks[2], (3 * H,)),
        "b_hh": u(ks[3], (3 * H,)),
        "w1":   u(ks[4], (H // 2, H)),                    # fc1
        "b1":   u(ks[5], (H // 2,)),
        "w2":   u(ks[6], (OUTPUT_FEATURES_NUM, H // 2)),  # fc2
        "b2":   u(ks[7], (OUTPUT_FEATURES_NUM,)),
    }

    Xp = jax.random.normal(ks[8], (B, T, OUTPUT_FEATURES_NUM), jnp.float32)

    prepared = prepare_decoder_params(params)                  # hoisted, one-time
    out, hn = decoder_gru_forward(Xp, prepared)
    jax.block_until_ready((out, hn))
    assert out.shape == (B, T, OUTPUT_FEATURES_NUM)
    assert hn.shape == (1, B, H)

    # Numerical check against an exact-f32 pure-JAX reference.
    # (Loose tol: kernel uses single-pass bf16 MXU matmuls through the recurrence.)
    out_ref, hn_ref = _reference(Xp, params, jnp.zeros((B, H), jnp.float32))
    err_o = float(jnp.max(jnp.abs(out - out_ref)))
    err_h = float(jnp.max(jnp.abs(hn - hn_ref)))
    assert err_o < 3e-2 and err_h < 3e-2, (err_o, err_h)

    print("KERNEL_OK")
</pallas_src>

<mosaic_0001>
module attributes {stable_mosaic.version = 11 : i64} {
  func.func @_decoder_gru_kernel(%arg0: memref<16x8xf32, #tpu.memory_space<vmem>>, %arg1: memref<2x32xf32, #tpu.memory_space<vmem>>, %arg2: memref<40x96xbf16, #tpu.memory_space<vmem>>, %arg3: memref<48x16xbf16, #tpu.memory_space<vmem>>, %arg4: memref<4x96xf32, #tpu.memory_space<vmem>>, %arg5: memref<16x8xf32, #tpu.memory_space<vmem>>, %arg6: memref<2x32xf32, #tpu.memory_space<vmem>>) attributes {dimension_semantics = [], scalar_prefetch = 0 : i64, scratch_operands = 0 : i64, tpu.core_type = #tpu.core_type<tc>} {
    %c0 = arith.constant 0 : index
    %c0_0 = arith.constant 0 : index
    %0 = vector.load %arg2[%c0, %c0_0] : memref<40x96xbf16, #tpu.memory_space<vmem>>, vector<32x96xbf16>
    %c32 = arith.constant 32 : index
    %c0_1 = arith.constant 0 : index
    %1 = vector.load %arg2[%c32, %c0_1] : memref<40x96xbf16, #tpu.memory_space<vmem>>, vector<8x96xbf16>
    %c0_2 = arith.constant 0 : index
    %c0_3 = arith.constant 0 : index
    %2 = vector.load %arg4[%c0_2, %c0_3] : memref<4x96xf32, #tpu.memory_space<vmem>>, vector<1x96xf32>
    %c1 = arith.constant 1 : index
    %c0_4 = arith.constant 0 : index
    %3 = vector.load %arg4[%c1, %c0_4] : memref<4x96xf32, #tpu.memory_space<vmem>>, vector<1x32xf32>
    %c0_5 = arith.constant 0 : index
    %c0_6 = arith.constant 0 : index
    %4 = vector.load %arg0[%c0_5, %c0_6] : memref<16x8xf32, #tpu.memory_space<vmem>>, vector<16x8xf32>
    %5 = arith.truncf %4 : vector<16x8xf32> to vector<16x8xbf16>
    %cst = arith.constant dense<0.000000e+00> : vector<16x96xf32>
    %6 = tpu.matmul %5, %1, %cst {dimension_numbers = #tpu.dot_dimension_numbers<[1], [0], [0], [1], [0, 0, 1, 1], [], []>} : vector<16x8xbf16>, vector<8x96xbf16>, vector<16x96xf32> -> vector<16x96xf32>
    %7 = vector.broadcast %2 : vector<1x96xf32> to vector<16x96xf32>
    %8 = arith.addf %6, %7 : vector<16x96xf32>
    %9 = vector.extract_strided_slice %8 {offsets = [0, 0], sizes = [1, 96], strides = [1, 1]} : vector<16x96xf32> to vector<1x96xf32>
    %10 = vector.extract_strided_slice %8 {offsets = [8, 0], sizes = [1, 96], strides = [1, 1]} : vector<16x96xf32> to vector<1x96xf32>
    %11 = tpu.concatenate %9, %10 in 0 : vector<1x96xf32>, vector<1x96xf32> -> vector<2x96xf32>
    %12 = vector.extract_strided_slice %8 {offsets = [1, 0], sizes = [1, 96], strides = [1, 1]} : vector<16x96xf32> to vector<1x96xf32>
    %13 = vector.extract_strided_slice %8 {offsets = [9, 0], sizes = [1, 96], strides = [1, 1]} : vector<16x96xf32> to vector<1x96xf32>
    %14 = tpu.concatenate %12, %13 in 0 : vector<1x96xf32>, vector<1x96xf32> -> vector<2x96xf32>
    %15 = vector.extract_strided_slice %8 {offsets = [2, 0], sizes = [1, 96], strides = [1, 1]} : vector<16x96xf32> to vector<1x96xf32>
    %16 = vector.extract_strided_slice %8 {offsets = [10, 0], sizes = [1, 96], strides = [1, 1]} : vector<16x96xf32> to vector<1x96xf32>
    %17 = tpu.concatenate %15, %16 in 0 : vector<1x96xf32>, vector<1x96xf32> -> vector<2x96xf32>
    %18 = vector.extract_strided_slice %8 {offsets = [3, 0], sizes = [1, 96], strides = [1, 1]} : vector<16x96xf32> to vector<1x96xf32>
    %19 = vector.extract_strided_slice %8 {offsets = [11, 0], sizes = [1, 96], strides = [1, 1]} : vector<16x96xf32> to vector<1x96xf32>
    %20 = tpu.concatenate %18, %19 in 0 : vector<1x96xf32>, vector<1x96xf32> -> vector<2x96xf32>
    %21 = vector.extract_strided_slice %8 {offsets = [4, 0], sizes = [1, 96], strides = [1, 1]} : vector<16x96xf32> to vector<1x96xf32>
    %22 = vector.extract_strided_slice %8 {offsets = [12, 0], sizes = [1, 96], strides = [1, 1]} : vector<16x96xf32> to vector<1x96xf32>
    %23 = tpu.concatenate %21, %22 in 0 : vector<1x96xf32>, vector<1x96xf32> -> vector<2x96xf32>
    %24 = vector.extract_strided_slice %8 {offsets = [5, 0], sizes = [1, 96], strides = [1, 1]} : vector<16x96xf32> to vector<1x96xf32>
    %25 = vector.extract_strided_slice %8 {offsets = [13, 0], sizes = [1, 96], strides = [1, 1]} : vector<16x96xf32> to vector<1x96xf32>
    %26 = tpu.concatenate %24, %25 in 0 : vector<1x96xf32>, vector<1x96xf32> -> vector<2x96xf32>
    %27 = vector.extract_strided_slice %8 {offsets = [6, 0], sizes = [1, 96], strides = [1, 1]} : vector<16x96xf32> to vector<1x96xf32>
    %28 = vector.extract_strided_slice %8 {offsets = [14, 0], sizes = [1, 96], strides = [1, 1]} : vector<16x96xf32> to vector<1x96xf32>
    %29 = tpu.concatenate %27, %28 in 0 : vector<1x96xf32>, vector<1x96xf32> -> vector<2x96xf32>
    %30 = vector.extract_strided_slice %8 {offsets = [7, 0], sizes = [1, 96], strides = [1, 1]} : vector<16x96xf32> to vector<1x96xf32>
    %31 = vector.extract_strided_slice %8 {offsets = [15, 0], sizes = [1, 96], strides = [1, 1]} : vector<16x96xf32> to vector<1x96xf32>
    %32 = tpu.concatenate %30, %31 in 0 : vector<1x96xf32>, vector<1x96xf32> -> vector<2x96xf32>
    %c0_7 = arith.constant 0 : index
    %c0_8 = arith.constant 0 : index
    %33 = vector.load %arg1[%c0_7, %c0_8] : memref<2x32xf32, #tpu.memory_space<vmem>>, vector<2x32xf32>
    %34 = arith.truncf %33 : vector<2x32xf32> to vector<2x32xbf16>
    %cst_9 = arith.constant dense<0.000000e+00> : vector<2x96xf32>
    %35 = tpu.matmul %34, %0, %cst_9 {dimension_numbers = #tpu.dot_dimension_numbers<[1], [0], [0], [1], [0, 0, 1, 1], [], []>} : vector<2x32xbf16>, vector<32x96xbf16>, vector<2x96xf32> -> vector<2x96xf32>
    %36 = vector.extract_strided_slice %11 {offsets = [0, 0], sizes = [2, 32], strides = [1, 1]} : vector<2x96xf32> to vector<2x32xf32>
    %37 = vector.extract_strided_slice %35 {offsets = [0, 0], sizes = [2, 32], strides = [1, 1]} : vector<2x96xf32> to vector<2x32xf32>
    %38 = arith.addf %36, %37 : vector<2x32xf32>
    %39 = arith.negf %38 : vector<2x32xf32>
    %40 = math.exp %39 : vector<2x32xf32>
    %cst_10 = arith.constant 1.000000e+00 : f32
    %41 = vector.broadcast %cst_10 : f32 to vector<2x32xf32>
    %42 = arith.addf %41, %40 : vector<2x32xf32>
    %43 = arith.divf %41, %42 : vector<2x32xf32>
    %44 = vector.extract_strided_slice %11 {offsets = [0, 32], sizes = [2, 32], strides = [1, 1]} : vector<2x96xf32> to vector<2x32xf32>
    %45 = vector.extract_strided_slice %35 {offsets = [0, 32], sizes = [2, 32], strides = [1, 1]} : vector<2x96xf32> to vector<2x32xf32>
    %46 = arith.addf %44, %45 : vector<2x32xf32>
    %47 = arith.negf %46 : vector<2x32xf32>
    %48 = math.exp %47 : vector<2x32xf32>
    %cst_11 = arith.constant 1.000000e+00 : f32
    %49 = vector.broadcast %cst_11 : f32 to vector<2x32xf32>
    %50 = arith.addf %49, %48 : vector<2x32xf32>
    %51 = arith.divf %49, %50 : vector<2x32xf32>
    %52 = vector.extract_strided_slice %11 {offsets = [0, 64], sizes = [2, 32], strides = [1, 1]} : vector<2x96xf32> to vector<2x32xf32>
    %53 = vector.extract_strided_slice %35 {offsets = [0, 64], sizes = [2, 32], strides = [1, 1]} : vector<2x96xf32> to vector<2x32xf32>
    %54 = vector.broadcast %3 : vector<1x32xf32> to vector<2x32xf32>
    %55 = arith.addf %53, %54 : vector<2x32xf32>
    %56 = arith.mulf %43, %55 : vector<2x32xf32>
    %57 = arith.addf %52, %56 : vector<2x32xf32>
    %58 = math.tanh %57 : vector<2x32xf32>
    %cst_12 = arith.constant 1.000000e+00 : f32
    %59 = vector.broadcast %cst_12 : f32 to vector<2x32xf32>
    %60 = arith.subf %59, %51 : vector<2x32xf32>
    %61 = arith.mulf %60, %58 : vector<2x32xf32>
    %62 = arith.mulf %51, %33 : vector<2x32xf32>
    %63 = arith.addf %61, %62 : vector<2x32xf32>
    %64 = arith.truncf %63 : vector<2x32xf32> to vector<2x32xbf16>
    %cst_13 = arith.constant dense<0.000000e+00> : vector<2x96xf32>
    %65 = tpu.matmul %64, %0, %cst_13 {dimension_numbers = #tpu.dot_dimension_numbers<[1], [0], [0], [1], [0, 0, 1, 1], [], []>} : vector<2x32xbf16>, vector<32x96xbf16>, vector<2x96xf32> -> vector<2x96xf32>
    %66 = vector.extract_strided_slice %14 {offsets = [0, 0], sizes = [2, 32], strides = [1, 1]} : vector<2x96xf32> to vector<2x32xf32>
    %67 = vector.extract_strided_slice %65 {offsets = [0, 0], sizes = [2, 32], strides = [1, 1]} : vector<2x96xf32> to vector<2x32xf32>
    %68 = arith.addf %66, %67 : vector<2x32xf32>
    %69 = arith.negf %68 : vector<2x32xf32>
    %70 = math.exp %69 : vector<2x32xf32>
    %cst_14 = arith.constant 1.000000e+00 : f32
    %71 = vector.broadcast %cst_14 : f32 to vector<2x32xf32>
    %72 = arith.addf %71, %70 : vector<2x32xf32>
    %73 = arith.divf %71, %72 : vector<2x32xf32>
    %74 = vector.extract_strided_slice %14 {offsets = [0, 32], sizes = [2, 32], strides = [1, 1]} : vector<2x96xf32> to vector<2x32xf32>
    %75 = vector.extract_strided_slice %65 {offsets = [0, 32], sizes = [2, 32], strides = [1, 1]} : vector<2x96xf32> to vector<2x32xf32>
    %76 = arith.addf %74, %75 : vector<2x32xf32>
    %77 = arith.negf %76 : vector<2x32xf32>
    %78 = math.exp %77 : vector<2x32xf32>
    %cst_15 = arith.constant 1.000000e+00 : f32
    %79 = vector.broadcast %cst_15 : f32 to vector<2x32xf32>
    %80 = arith.addf %79, %78 : vector<2x32xf32>
    %81 = arith.divf %79, %80 : vector<2x32xf32>
    %82 = vector.extract_strided_slice %14 {offsets = [0, 64], sizes = [2, 32], strides = [1, 1]} : vector<2x96xf32> to vector<2x32xf32>
    %83 = vector.extract_strided_slice %65 {offsets = [0, 64], sizes = [2, 32], strides = [1, 1]} : vector<2x96xf32> to vector<2x32xf32>
    %84 = vector.broadcast %3 : vector<1x32xf32> to vector<2x32xf32>
    %85 = arith.addf %83, %84 : vector<2x32xf32>
    %86 = arith.mulf %73, %85 : vector<2x32xf32>
    %87 = arith.addf %82, %86 : vector<2x32xf32>
    %88 = math.tanh %87 : vector<2x32xf32>
    %cst_16 = arith.constant 1.000000e+00 : f32
    %89 = vector.broadcast %cst_16 : f32 to vector<2x32xf32>
    %90 = arith.subf %89, %81 : vector<2x32xf32>
    %91 = arith.mulf %90, %88 : vector<2x32xf32>
    %92 = arith.mulf %81, %63 : vector<2x32xf32>
    %93 = arith.addf %91, %92 : vector<2x32xf32>
    %94 = arith.truncf %93 : vector<2x32xf32> to vector<2x32xbf16>
    %cst_17 = arith.constant dense<0.000000e+00> : vector<2x96xf32>
    %95 = tpu.matmul %94, %0, %cst_17 {dimension_numbers = #tpu.dot_dimension_numbers<[1], [0], [0], [1], [0, 0, 1, 1], [], []>} : vector<2x32xbf16>, vector<32x96xbf16>, vector<2x96xf32> -> vector<2x96xf32>
    %96 = vector.extract_strided_slice %17 {offsets = [0, 0], sizes = [2, 32], strides = [1, 1]} : vector<2x96xf32> to vector<2x32xf32>
    %97 = vector.extract_strided_slice %95 {offsets = [0, 0], sizes = [2, 32], strides = [1, 1]} : vector<2x96xf32> to vector<2x32xf32>
    %98 = arith.addf %96, %97 : vector<2x32xf32>
    %99 = arith.negf %98 : vector<2x32xf32>
    %100 = math.exp %99 : vector<2x32xf32>
    %cst_18 = arith.constant 1.000000e+00 : f32
    %101 = vector.broadcast %cst_18 : f32 to vector<2x32xf32>
    %102 = arith.addf %101, %100 : vector<2x32xf32>
    %103 = arith.divf %101, %102 : vector<2x32xf32>
    %104 = vector.extract_strided_slice %17 {offsets = [0, 32], sizes = [2, 32], strides = [1, 1]} : vector<2x96xf32> to vector<2x32xf32>
    %105 = vector.extract_strided_slice %95 {offsets = [0, 32], sizes = [2, 32], strides = [1, 1]} : vector<2x96xf32> to vector<2x32xf32>
    %106 = arith.addf %104, %105 : vector<2x32xf32>
    %107 = arith.negf %106 : vector<2x32xf32>
    %108 = math.exp %107 : vector<2x32xf32>
    %cst_19 = arith.constant 1.000000e+00 : f32
    %109 = vector.broadcast %cst_19 : f32 to vector<2x32xf32>
    %110 = arith.addf %109, %108 : vector<2x32xf32>
    %111 = arith.divf %109, %110 : vector<2x32xf32>
    %112 = vector.extract_strided_slice %17 {offsets = [0, 64], sizes = [2, 32], strides = [1, 1]} : vector<2x96xf32> to vector<2x32xf32>
    %113 = vector.extract_strided_slice %95 {offsets = [0, 64], sizes = [2, 32], strides = [1, 1]} : vector<2x96xf32> to vector<2x32xf32>
    %114 = vector.broadcast %3 : vector<1x32xf32> to vector<2x32xf32>
    %115 = arith.addf %113, %114 : vector<2x32xf32>
    %116 = arith.mulf %103, %115 : vector<2x32xf32>
    %117 = arith.addf %112, %116 : vector<2x32xf32>
    %118 = math.tanh %117 : vector<2x32xf32>
    %cst_20 = arith.constant 1.000000e+00 : f32
    %119 = vector.broadcast %cst_20 : f32 to vector<2x32xf32>
    %120 = arith.subf %119, %111 : vector<2x32xf32>
    %121 = arith.mulf %120, %118 : vector<2x32xf32>
    %122 = arith.mulf %111, %93 : vector<2x32xf32>
    %123 = arith.addf %121, %122 : vector<2x32xf32>
    %124 = arith.truncf %123 : vector<2x32xf32> to vector<2x32xbf16>
    %cst_21 = arith.constant dense<0.000000e+00> : vector<2x96xf32>
    %125 = tpu.matmul %124, %0, %cst_21 {dimension_numbers = #tpu.dot_dimension_numbers<[1], [0], [0], [1], [0, 0, 1, 1], [], []>} : vector<2x32xbf16>, vector<32x96xbf16>, vector<2x96xf32> -> vector<2x96xf32>
    %126 = vector.extract_strided_slice %20 {offsets = [0, 0], sizes = [2, 32], strides = [1, 1]} : vector<2x96xf32> to vector<2x32xf32>
    %127 = vector.extract_strided_slice %125 {offsets = [0, 0], sizes = [2, 32], strides = [1, 1]} : vector<2x96xf32> to vector<2x32xf32>
    %128 = arith.addf %126, %127 : vector<2x32xf32>
    %129 = arith.negf %128 : vector<2x32xf32>
    %130 = math.exp %129 : vector<2x32xf32>
    %cst_22 = arith.constant 1.000000e+00 : f32
    %131 = vector.broadcast %cst_22 : f32 to vector<2x32xf32>
    %132 = arith.addf %131, %130 : vector<2x32xf32>
    %133 = arith.divf %131, %132 : vector<2x32xf32>
    %134 = vector.extract_strided_slice %20 {offsets = [0, 32], sizes = [2, 32], strides = [1, 1]} : vector<2x96xf32> to vector<2x32xf32>
    %135 = vector.extract_strided_slice %125 {offsets = [0, 32], sizes = [2, 32], strides = [1, 1]} : vector<2x96xf32> to vector<2x32xf32>
    %136 = arith.addf %134, %135 : vector<2x32xf32>
    %137 = arith.negf %136 : vector<2x32xf32>
    %138 = math.exp %137 : vector<2x32xf32>
    %cst_23 = arith.constant 1.000000e+00 : f32
    %139 = vector.broadcast %cst_23 : f32 to vector<2x32xf32>
    %140 = arith.addf %139, %138 : vector<2x32xf32>
    %141 = arith.divf %139, %140 : vector<2x32xf32>
    %142 = vector.extract_strided_slice %20 {offsets = [0, 64], sizes = [2, 32], strides = [1, 1]} : vector<2x96xf32> to vector<2x32xf32>
    %143 = vector.extract_strided_slice %125 {offsets = [0, 64], sizes = [2, 32], strides = [1, 1]} : vector<2x96xf32> to vector<2x32xf32>
    %144 = vector.broadcast %3 : vector<1x32xf32> to vector<2x32xf32>
    %145 = arith.addf %143, %144 : vector<2x32xf32>
    %146 = arith.mulf %133, %145 : vector<2x32xf32>
    %147 = arith.addf %142, %146 : vector<2x32xf32>
    %148 = math.tanh %147 : vector<2x32xf32>
    %cst_24 = arith.constant 1.000000e+00 : f32
    %149 = vector.broadcast %cst_24 : f32 to vector<2x32xf32>
    %150 = arith.subf %149, %141 : vector<2x32xf32>
    %151 = arith.mulf %150, %148 : vector<2x32xf32>
    %152 = arith.mulf %141, %123 : vector<2x32xf32>
    %153 = arith.addf %151, %152 : vector<2x32xf32>
    %154 = arith.truncf %153 : vector<2x32xf32> to vector<2x32xbf16>
    %cst_25 = arith.constant dense<0.000000e+00> : vector<2x96xf32>
    %155 = tpu.matmul %154, %0, %cst_25 {dimension_numbers = #tpu.dot_dimension_numbers<[1], [0], [0], [1], [0, 0, 1, 1], [], []>} : vector<2x32xbf16>, vector<32x96xbf16>, vector<2x96xf32> -> vector<2x96xf32>
    %156 = vector.extract_strided_slice %23 {offsets = [0, 0], sizes = [2, 32], strides = [1, 1]} : vector<2x96xf32> to vector<2x32xf32>
    %157 = vector.extract_strided_slice %155 {offsets = [0, 0], sizes = [2, 32], strides = [1, 1]} : vector<2x96xf32> to vector<2x32xf32>
    %158 = arith.addf %156, %157 : vector<2x32xf32>
    %159 = arith.negf %158 : vector<2x32xf32>
    %160 = math.exp %159 : vector<2x32xf32>
    %cst_26 = arith.constant 1.000000e+00 : f32
    %161 = vector.broadcast %cst_26 : f32 to vector<2x32xf32>
    %162 = arith.addf %161, %160 : vector<2x32xf32>
    %163 = arith.divf %161, %162 : vector<2x32xf32>
    %164 = vector.extract_strided_slice %23 {offsets = [0, 32], sizes = [2, 32], strides = [1, 1]} : vector<2x96xf32> to vector<2x32xf32>
    %165 = vector.extract_strided_slice %155 {offsets = [0, 32], sizes = [2, 32], strides = [1, 1]} : vector<2x96xf32> to vector<2x32xf32>
    %166 = arith.addf %164, %165 : vector<2x32xf32>
    %167 = arith.negf %166 : vector<2x32xf32>
    %168 = math.exp %167 : vector<2x32xf32>
    %cst_27 = arith.constant 1.000000e+00 : f32
    %169 = vector.broadcast %cst_27 : f32 to vector<2x32xf32>
    %170 = arith.addf %169, %168 : vector<2x32xf32>
    %171 = arith.divf %169, %170 : vector<2x32xf32>
    %172 = vector.extract_strided_slice %23 {offsets = [0, 64], sizes = [2, 32], strides = [1, 1]} : vector<2x96xf32> to vector<2x32xf32>
    %173 = vector.extract_strided_slice %155 {offsets = [0, 64], sizes = [2, 32], strides = [1, 1]} : vector<2x96xf32> to vector<2x32xf32>
    %174 = vector.broadcast %3 : vector<1x32xf32> to vector<2x32xf32>
    %175 = arith.addf %173, %174 : vector<2x32xf32>
    %176 = arith.mulf %163, %175 : vector<2x32xf32>
    %177 = arith.addf %172, %176 : vector<2x32xf32>
    %178 = math.tanh %177 : vector<2x32xf32>
    %cst_28 = arith.constant 1.000000e+00 : f32
    %179 = vector.broadcast %cst_28 : f32 to vector<2x32xf32>
    %180 = arith.subf %179, %171 : vector<2x32xf32>
    %181 = arith.mulf %180, %178 : vector<2x32xf32>
    %182 = arith.mulf %171, %153 : vector<2x32xf32>
    %183 = arith.addf %181, %182 : vector<2x32xf32>
    %184 = arith.truncf %183 : vector<2x32xf32> to vector<2x32xbf16>
    %cst_29 = arith.constant dense<0.000000e+00> : vector<2x96xf32>
    %185 = tpu.matmul %184, %0, %cst_29 {dimension_numbers = #tpu.dot_dimension_numbers<[1], [0], [0], [1], [0, 0, 1, 1], [], []>} : vector<2x32xbf16>, vector<32x96xbf16>, vector<2x96xf32> -> vector<2x96xf32>
    %186 = vector.extract_strided_slice %26 {offsets = [0, 0], sizes = [2, 32], strides = [1, 1]} : vector<2x96xf32> to vector<2x32xf32>
    %187 = vector.extract_strided_slice %185 {offsets = [0, 0], sizes = [2, 32], strides = [1, 1]} : vector<2x96xf32> to vector<2x32xf32>
    %188 = arith.addf %186, %187 : vector<2x32xf32>
    %189 = arith.negf %188 : vector<2x32xf32>
    %190 = math.exp %189 : vector<2x32xf32>
    %cst_30 = arith.constant 1.000000e+00 : f32
    %191 = vector.broadcast %cst_30 : f32 to vector<2x32xf32>
    %192 = arith.addf %191, %190 : vector<2x32xf32>
    %193 = arith.divf %191, %192 : vector<2x32xf32>
    %194 = vector.extract_strided_slice %26 {offsets = [0, 32], sizes = [2, 32], strides = [1, 1]} : vector<2x96xf32> to vector<2x32xf32>
    %195 = vector.extract_strided_slice %185 {offsets = [0, 32], sizes = [2, 32], strides = [1, 1]} : vector<2x96xf32> to vector<2x32xf32>
    %196 = arith.addf %194, %195 : vector<2x32xf32>
    %197 = arith.negf %196 : vector<2x32xf32>
    %198 = math.exp %197 : vector<2x32xf32>
    %cst_31 = arith.constant 1.000000e+00 : f32
    %199 = vector.broadcast %cst_31 : f32 to vector<2x32xf32>
    %200 = arith.addf %199, %198 : vector<2x32xf32>
    %201 = arith.divf %199, %200 : vector<2x32xf32>
    %202 = vector.extract_strided_slice %26 {offsets = [0, 64], sizes = [2, 32], strides = [1, 1]} : vector<2x96xf32> to vector<2x32xf32>
    %203 = vector.extract_strided_slice %185 {offsets = [0, 64], sizes = [2, 32], strides = [1, 1]} : vector<2x96xf32> to vector<2x32xf32>
    %204 = vector.broadcast %3 : vector<1x32xf32> to vector<2x32xf32>
    %205 = arith.addf %203, %204 : vector<2x32xf32>
    %206 = arith.mulf %193, %205 : vector<2x32xf32>
    %207 = arith.addf %202, %206 : vector<2x32xf32>
    %208 = math.tanh %207 : vector<2x32xf32>
    %cst_32 = arith.constant 1.000000e+00 : f32
    %209 = vector.broadcast %cst_32 : f32 to vector<2x32xf32>
    %210 = arith.subf %209, %201 : vector<2x32xf32>
    %211 = arith.mulf %210, %208 : vector<2x32xf32>
    %212 = arith.mulf %201, %183 : vector<2x32xf32>
    %213 = arith.addf %211, %212 : vector<2x32xf32>
    %214 = arith.truncf %213 : vector<2x32xf32> to vector<2x32xbf16>
    %cst_33 = arith.constant dense<0.000000e+00> : vector<2x96xf32>
    %215 = tpu.matmul %214, %0, %cst_33 {dimension_numbers = #tpu.dot_dimension_numbers<[1], [0], [0], [1], [0, 0, 1, 1], [], []>} : vector<2x32xbf16>, vector<32x96xbf16>, vector<2x96xf32> -> vector<2x96xf32>
    %216 = vector.extract_strided_slice %29 {offsets = [0, 0], sizes = [2, 32], strides = [1, 1]} : vector<2x96xf32> to vector<2x32xf32>
    %217 = vector.extract_strided_slice %215 {offsets = [0, 0], sizes = [2, 32], strides = [1, 1]} : vector<2x96xf32> to vector<2x32xf32>
    %218 = arith.addf %216, %217 : vector<2x32xf32>
    %219 = arith.negf %218 : vector<2x32xf32>
    %220 = math.exp %219 : vector<2x32xf32>
    %cst_34 = arith.constant 1.000000e+00 : f32
    %221 = vector.broadcast %cst_34 : f32 to vector<2x32xf32>
    %222 = arith.addf %221, %220 : vector<2x32xf32>
    %223 = arith.divf %221, %222 : vector<2x32xf32>
    %224 = vector.extract_strided_slice %29 {offsets = [0, 32], sizes = [2, 32], strides = [1, 1]} : vector<2x96xf32> to vector<2x32xf32>
    %225 = vector.extract_strided_slice %215 {offsets = [0, 32], sizes = [2, 32], strides = [1, 1]} : vector<2x96xf32> to vector<2x32xf32>
    %226 = arith.addf %224, %225 : vector<2x32xf32>
    %227 = arith.negf %226 : vector<2x32xf32>
    %228 = math.exp %227 : vector<2x32xf32>
    %cst_35 = arith.constant 1.000000e+00 : f32
    %229 = vector.broadcast %cst_35 : f32 to vector<2x32xf32>
    %230 = arith.addf %229, %228 : vector<2x32xf32>
    %231 = arith.divf %229, %230 : vector<2x32xf32>
    %232 = vector.extract_strided_slice %29 {offsets = [0, 64], sizes = [2, 32], strides = [1, 1]} : vector<2x96xf32> to vector<2x32xf32>
    %233 = vector.extract_strided_slice %215 {offsets = [0, 64], sizes = [2, 32], strides = [1, 1]} : vector<2x96xf32> to vector<2x32xf32>
    %234 = vector.broadcast %3 : vector<1x32xf32> to vector<2x32xf32>
    %235 = arith.addf %233, %234 : vector<2x32xf32>
    %236 = arith.mulf %223, %235 : vector<2x32xf32>
    %237 = arith.addf %232, %236 : vector<2x32xf32>
    %238 = math.tanh %237 : vector<2x32xf32>
    %cst_36 = arith.constant 1.000000e+00 : f32
    %239 = vector.broadcast %cst_36 : f32 to vector<2x32xf32>
    %240 = arith.subf %239, %231 : vector<2x32xf32>
    %241 = arith.mulf %240, %238 : vector<2x32xf32>
    %242 = arith.mulf %231, %213 : vector<2x32xf32>
    %243 = arith.addf %241, %242 : vector<2x32xf32>
    %244 = arith.truncf %243 : vector<2x32xf32> to vector<2x32xbf16>
    %cst_37 = arith.constant dense<0.000000e+00> : vector<2x96xf32>
    %245 = tpu.matmul %244, %0, %cst_37 {dimension_numbers = #tpu.dot_dimension_numbers<[1], [0], [0], [1], [0, 0, 1, 1], [], []>} : vector<2x32xbf16>, vector<32x96xbf16>, vector<2x96xf32> -> vector<2x96xf32>
    %246 = vector.extract_strided_slice %32 {offsets = [0, 0], sizes = [2, 32], strides = [1, 1]} : vector<2x96xf32> to vector<2x32xf32>
    %247 = vector.extract_strided_slice %245 {offsets = [0, 0], sizes = [2, 32], strides = [1, 1]} : vector<2x96xf32> to vector<2x32xf32>
    %248 = arith.addf %246, %247 : vector<2x32xf32>
    %249 = arith.negf %248 : vector<2x32xf32>
    %250 = math.exp %249 : vector<2x32xf32>
    %cst_38 = arith.constant 1.000000e+00 : f32
    %251 = vector.broadcast %cst_38 : f32 to vector<2x32xf32>
    %252 = arith.addf %251, %250 : vector<2x32xf32>
    %253 = arith.divf %251, %252 : vector<2x32xf32>
    %254 = vector.extract_strided_slice %32 {offsets = [0, 32], sizes = [2, 32], strides = [1, 1]} : vector<2x96xf32> to vector<2x32xf32>
    %255 = vector.extract_strided_slice %245 {offsets = [0, 32], sizes = [2, 32], strides = [1, 1]} : vector<2x96xf32> to vector<2x32xf32>
    %256 = arith.addf %254, %255 : vector<2x32xf32>
    %257 = arith.negf %256 : vector<2x32xf32>
    %258 = math.exp %257 : vector<2x32xf32>
    %cst_39 = arith.constant 1.000000e+00 : f32
    %259 = vector.broadcast %cst_39 : f32 to vector<2x32xf32>
    %260 = arith.addf %259, %258 : vector<2x32xf32>
    %261 = arith.divf %259, %260 : vector<2x32xf32>
    %262 = vector.extract_strided_slice %32 {offsets = [0, 64], sizes = [2, 32], strides = [1, 1]} : vector<2x96xf32> to vector<2x32xf32>
    %263 = vector.extract_strided_slice %245 {offsets = [0, 64], sizes = [2, 32], strides = [1, 1]} : vector<2x96xf32> to vector<2x32xf32>
    %264 = vector.broadcast %3 : vector<1x32xf32> to vector<2x32xf32>
    %265 = arith.addf %263, %264 : vector<2x32xf32>
    %266 = arith.mulf %253, %265 : vector<2x32xf32>
    %267 = arith.addf %262, %266 : vector<2x32xf32>
    %268 = math.tanh %267 : vector<2x32xf32>
    %cst_40 = arith.constant 1.000000e+00 : f32
    %269 = vector.broadcast %cst_40 : f32 to vector<2x32xf32>
    %270 = arith.subf %269, %261 : vector<2x32xf32>
    %271 = arith.mulf %270, %268 : vector<2x32xf32>
    %272 = arith.mulf %261, %243 : vector<2x32xf32>
    %273 = arith.addf %271, %272 : vector<2x32xf32>
    %c0_41 = arith.constant 0 : index
    %c0_42 = arith.constant 0 : index
    %274 = vector.load %arg6[%c0_41, %c0_42] : memref<2x32xf32, #tpu.memory_space<vmem>>, vector<2x32xf32>
    tpu.vector_store %arg6[%c0_41, %c0_42], %273 {strides = array<i32>} : memref<2x32xf32, #tpu.memory_space<vmem>>, vector<2x32xf32>,
    %275 = vector.extract_strided_slice %63 {offsets = [0, 0], sizes = [1, 32], strides = [1, 1]} : vector<2x32xf32> to vector<1x32xf32>
    %276 = vector.extract_strided_slice %93 {offsets = [0, 0], sizes = [1, 32], strides = [1, 1]} : vector<2x32xf32> to vector<1x32xf32>
    %277 = vector.extract_strided_slice %123 {offsets = [0, 0], sizes = [1, 32], strides = [1, 1]} : vector<2x32xf32> to vector<1x32xf32>
    %278 = vector.extract_strided_slice %153 {offsets = [0, 0], sizes = [1, 32], strides = [1, 1]} : vector<2x32xf32> to vector<1x32xf32>
    %279 = vector.extract_strided_slice %183 {offsets = [0, 0], sizes = [1, 32], strides = [1, 1]} : vector<2x32xf32> to vector<1x32xf32>
    %280 = vector.extract_strided_slice %213 {offsets = [0, 0], sizes = [1, 32], strides = [1, 1]} : vector<2x32xf32> to vector<1x32xf32>
    %281 = vector.extract_strided_slice %243 {offsets = [0, 0], sizes = [1, 32], strides = [1, 1]} : vector<2x32xf32> to vector<1x32xf32>
    %282 = vector.extract_strided_slice %273 {offsets = [0, 0], sizes = [1, 32], strides = [1, 1]} : vector<2x32xf32> to vector<1x32xf32>
    %283 = vector.extract_strided_slice %63 {offsets = [1, 0], sizes = [1, 32], strides = [1, 1]} : vector<2x32xf32> to vector<1x32xf32>
    %284 = vector.extract_strided_slice %93 {offsets = [1, 0], sizes = [1, 32], strides = [1, 1]} : vector<2x32xf32> to vector<1x32xf32>
    %285 = vector.extract_strided_slice %123 {offsets = [1, 0], sizes = [1, 32], strides = [1, 1]} : vector<2x32xf32> to vector<1x32xf32>
    %286 = vector.extract_strided_slice %153 {offsets = [1, 0], sizes = [1, 32], strides = [1, 1]} : vector<2x32xf32> to vector<1x32xf32>
    %287 = vector.extract_strided_slice %183 {offsets = [1, 0], sizes = [1, 32], strides = [1, 1]} : vector<2x32xf32> to vector<1x32xf32>
    %288 = vector.extract_strided_slice %213 {offsets = [1, 0], sizes = [1, 32], strides = [1, 1]} : vector<2x32xf32> to vector<1x32xf32>
    %289 = vector.extract_strided_slice %243 {offsets = [1, 0], sizes = [1, 32], strides = [1, 1]} : vector<2x32xf32> to vector<1x32xf32>
    %290 = vector.extract_strided_slice %273 {offsets = [1, 0], sizes = [1, 32], strides = [1, 1]} : vector<2x32xf32> to vector<1x32xf32>
    %291 = tpu.concatenate %275, %276, %277, %278, %279, %280, %281, %282, %283, %284, %285, %286, %287, %288, %289, %290 in 0 : vector<1x32xf32>, vector<1x32xf32>, vector<1x32xf32>, vector<1x32xf32>, vector<1x32xf32>, vector<1x32xf32>, vector<1x32xf32>, vector<1x32xf32>, vector<1x32xf32>, vector<1x32xf32>, vector<1x32xf32>, vector<1x32xf32>, vector<1x32xf32>, vector<1x32xf32>, vector<1x32xf32>, vector<1x32xf32> -> vector<16x32xf32>
    %c0_43 = arith.constant 0 : index
    %c0_44 = arith.constant 0 : index
    %292 = vector.load %arg3[%c0_43, %c0_44] : memref<48x16xbf16, #tpu.memory_space<vmem>>, vector<32x16xbf16>
    %c32_45 = arith.constant 32 : index
    %c0_46 = arith.constant 0 : index
    %293 = vector.load %arg3[%c32_45, %c0_46] : memref<48x16xbf16, #tpu.memory_space<vmem>>, vector<16x8xbf16>
    %c2 = arith.constant 2 : index
    %c0_47 = arith.constant 0 : index
    %294 = vector.load %arg4[%c2, %c0_47] : memref<4x96xf32, #tpu.memory_space<vmem>>, vector<1x16xf32>
    %c3 = arith.constant 3 : index
    %c0_48 = arith.constant 0 : index
    %295 = vector.load %arg4[%c3, %c0_48] : memref<4x96xf32, #tpu.memory_space<vmem>>, vector<1x8xf32>
    %296 = arith.truncf %291 : vector<16x32xf32> to vector<16x32xbf16>
    %cst_49 = arith.constant dense<0.000000e+00> : vector<16x16xf32>
    %297 = tpu.matmul %296, %292, %cst_49 {dimension_numbers = #tpu.dot_dimension_numbers<[1], [0], [0], [1], [0, 0, 1, 1], [], []>} : vector<16x32xbf16>, vector<32x16xbf16>, vector<16x16xf32> -> vector<16x16xf32>
    %298 = vector.broadcast %294 : vector<1x16xf32> to vector<16x16xf32>
    %299 = arith.addf %297, %298 : vector<16x16xf32>
    %cst_50 = arith.constant 0.000000e+00 : f32
    %300 = vector.broadcast %cst_50 : f32 to vector<16x16xf32>
    %301 = arith.cmpf ogt, %299, %300 : vector<16x16xf32>
    %cst_51 = arith.constant 0.00999999977 : f32
    %302 = vector.broadcast %cst_51 : f32 to vector<16x16xf32>
    %303 = arith.mulf %302, %299 : vector<16x16xf32>
    %304 = arith.select %301, %299, %303 : vector<16x16xi1>, vector<16x16xf32>
    %305 = arith.truncf %304 : vector<16x16xf32> to vector<16x16xbf16>
    %cst_52 = arith.constant dense<0.000000e+00> : vector<16x8xf32>
    %306 = tpu.matmul %305, %293, %cst_52 {dimension_numbers = #tpu.dot_dimension_numbers<[1], [0], [0], [1], [0, 0, 1, 1], [], []>} : vector<16x16xbf16>, vector<16x8xbf16>, vector<16x8xf32> -> vector<16x8xf32>
    %307 = vector.broadcast %295 : vector<1x8xf32> to vector<16x8xf32>
    %308 = arith.addf %306, %307 : vector<16x8xf32>
    %c0_53 = arith.constant 0 : index
    %c0_54 = arith.constant 0 : index
    %309 = vector.load %arg5[%c0_53, %c0_54] : memref<16x8xf32, #tpu.memory_space<vmem>>, vector<16x8xf32>
    tpu.vector_store %arg5[%c0_53, %c0_54], %308 {strides = array<i32>} : memref<16x8xf32, #tpu.memory_space<vmem>>, vector<16x8xf32>,
    return
  }
}

</mosaic_0001>

<bundles_post_ra>
// kernel: tpu_custom_call.1
= control target key start
LH: loop header
LB: loop body
LE: loop exit
PB: predicated region body
PF: predicated region fallthrough
CT: control target
= control target key end

     0   :  { %vm42_vm0 = vcmask 1043456   ;;  %v1181_v1 = vmov 0.0   ;;  %vm1182_vm1 = vmmov 0   ;;  %vm38_vm2 = vcmask 64512   ;;  %s1489_s0 = inlined_call_operand.vmem [shape: f32[16,8], index: 0, kind: input, shape index: {}]   ;;  %s1490_s1 = inlined_call_operand.vmem [shape: f32[2,32], index: 1, kind: input, shape index: {}]   ;;  %s1491_s2 = inlined_call_operand.vmem [shape: bf16[40,96], index: 2, kind: input, shape index: {}]   ;;  %s1492_s3 = inlined_call_operand.vmem [shape: bf16[48,16], index: 3, kind: input, shape index: {}]   ;;  %s1493_s4 = inlined_call_operand.vmem [shape: f32[4,96], index: 4, kind: input, shape index: {}]   ;;  %s1494_s5 = inlined_call_operand.vmem [shape: f32[16,8], index: 5, kind: output, shape index: {0}]   ;;  %s1495_s6 = inlined_call_operand.hbm [shape: f32[2,32], index: 6, kind: output, shape index: {1}]  }
   0x1   :  { %v28_v0 = vld [vmem:[%s1491_s2 + $0x10] sm:$0xf]  ;;  %1014 = vmatprep.subr.bf16.mxu0 %v1181_v1  ;;  %1020 = vmatprep.subr.bf16.mxu1 %v1181_v1  ;;  %v1231_v3 = vld [vmem:[%s1491_s2] sm:$0xff]   ;;  %v32_v5 = vld [vmem:[%s1489_s0 + $0x8] sm:$0xff] }
   0x2   :  { %v44_v2 = vsel %vm42_vm0, %v28_v0, 0  ;;  %v31_v4 = vld [vmem:[%s1489_s0] sm:$0xff]  ;;  %1016 = vmatprep.mubr.msk.bf16.mxu0 %vm1182_vm1, %v1181_v1  ;;  %1021 = vmatpush3.bf16.msra.mxu1 %v1231_v3  ;;  %v1245_v7 = vld [vmem:[%s1491_s2 + $0x8] sm:$0xff]   ;;  %s1183_s0 = smov 64  }
   0x3   :  { %1015 = vmatpush3.bf16.msra.mxu0 %v44_v2  ;;  %v33_v6 = vpack.c.bf16 %v32_v5, %v31_v4  ;;  %1024 = vmatprep.mubr.msk.bf16.mxu1 %vm1182_vm1, %v1181_v1  ;;  %v126_v8 = vld [vmem:[%s1490_s1] sm:$0x3] }
   0x4   :  { %v961_v9 = vld [vmem:[%s1493_s4 + $0x1] ss:$0 sm:$0xff]  ;;  %1022 = vmatprep.subr.bf16.mxu1 %v1181_v1  ;;  %1028 = vmatprep.subr.bf16.mxu0 %v1181_v1  ;;  %v127_v10 = vpack.c.bf16 %v126_v8, %v126_v8 }
   0x5   :  { %196 = vrot.lane.b32.xlu0 %v961_v9, %s1183_s0 }
   0x6   :  { %1017 = vmatmul.mubr.msk.bf16.vlgmr.msra.gmra.mrb[0].mxu0 %vm38_vm2, %v33_v6 }
   0x7   :  { %1029 = vmatpush3.bf16.msra.mxu0 %v1231_v3  ;;  %1032 = vmatprep.mubr.msk.bf16.mxu0 %vm1182_vm1, %v1181_v1 }
   0x8   :  { %12 = vsyncpa [#allocation3], 0  ;;  %1023 = vmatpush3.bf16.msra.mxu1 %v1245_v7  ;;  %vm140_vm3 = vcmask 261120   ;;  %1030 = vmatprep.subr.bf16.mxu0 %v1181_v1  ;;  %v955_v11 = vld [vmem:[%s1493_s4] ss:$0 sm:$0xff]  ;;  %vm90_vm4 = vcmask 1040384  }
   0x9   :  { %1036 = vmatprep.subr.bf16.mxu1 %v1181_v1  ;;  %s1184_s11 = smov 32   ;;  %s1185_s12 = smov 96   ;;  %vm783_vm5 = vcmask 1041408   ;;  %vm785_vm6 = vcmask 1042432   ;;  %vm788_vm7 = vcmask 1044480   ;;  %vm790_vm8 = vcmask 1045504  }
   0xa   :  { %vm792_vm9 = vcmask 1046528   ;;  %vm745_vm10 = vcmask 254976   ;;  %vm890_vm13 = vcmask 130048  }
   0xb   :  { %1025 = vmatmul.mubr.msk.bf16.vlgmr.msra.gmra.mrb[0].mxu1 %vm140_vm3, %v127_v10  ;;  %1031 = vmatpush3.bf16.msra.mxu0 %v1245_v7 }
   0xc   :  { %1037 = vmatpush3.bf16.msra.mxu1 %v1231_v3  ;;  %1040 = vmatprep.mubr.msk.bf16.mxu1 %vm1182_vm1, %v1181_v1 }
   0xd   :  { %1038 = vmatprep.subr.bf16.mxu1 %v1181_v1  ;;  %1044 = vmatprep.subr.bf16.mxu0 %v1181_v1 }
  0x10   :  { %1039 = vmatpush3.bf16.msra.mxu1 %v1245_v7 }
  0x11   :  { %1052 = vmatprep.subr.bf16.mxu1 %v1181_v1 }
  0x77   :  { %v1277_v17 = vpop.permute.xlu0 %196 }
  0xd9   :  { %v80_v12 = vpop.f32.mrb[0].mxu0 }
  0xda   :  { %v81_v13 = vadd.f32 %v955_v11, %v80_v12  ;;  %v1018_v14 = vpop.f32.mrb[1].mxu0 }
  0xdb   :  { %v83_v15 = vpop.f32.mrb[2].mxu0 }
  0xdc   :  { %v84_v16 = vadd.f32 %v955_v11, %v83_v15  ;;  %v1019_v18 = vpop.f32.mrb[3].mxu0  ;;  %v93_v19 = vrot.slane %v81_v13, 1  ;;  %v96_v20 = vrot.slane %v81_v13, 2  ;;  %v101_v21 = vrot.slane %v81_v13, 3 }
  0xdd   :  { %v106_v22 = vrot.slane %v81_v13, 4  ;;  %v111_v23 = vrot.slane %v81_v13, 5  ;;  %v116_v24 = vrot.slane %v81_v13, 6  ;;  %v121_v25 = vrot.slane %v81_v13, 7 }
  0xde   :  { %v88_v26 = vrot.slane %v84_v16, 7  ;;  %v178_v27 = vpop.f32.mrb[0].mxu1  ;;  %v1280_v28 = vsel %vm90_vm4, %v93_v19, %v84_v16  ;;  %v98_v29 = vrot.slane %v84_v16, 1  ;;  %v103_v30 = vrot.slane %v84_v16, 2 }
  0xdf   :  { %v199_v31 = vadd.f32 %v1277_v17, %v178_v27  ;;  %v1026_v32 = vpop.f32.mrb[1].mxu1  ;;  %v108_v33 = vrot.slane %v84_v16, 3  ;;  %v113_v34 = vrot.slane %v84_v16, 4  ;;  %v118_v35 = vrot.slane %v84_v16, 5 }
  0xe0   :  { %v91_v36 = vsel %vm90_vm4, %v81_v13, %v88_v26  ;;  %v181_v37 = vpop.f32.mrb[2].mxu1  ;;  %v1285_v38 = vsel %vm90_vm4, %v96_v20, %v98_v29  ;;  %v1288_v39 = vsel %vm90_vm4, %v101_v21, %v103_v30  ;;  %v123_v40 = vrot.slane %v84_v16, 6 }
  0xe1   :  { %201 = vrot.lane.b32.xlu0 %v199_v31, %s1183_s0  ;;  %v1027_v41 = vpop.f32.mrb[3].mxu1  ;;  %v1292_v42 = vsel %vm90_vm4, %v106_v22, %v108_v33  ;;  %v1295_v43 = vsel %vm90_vm4, %v111_v23, %v113_v34  ;;  %v1298_v44 = vsel %vm90_vm4, %v116_v24, %v118_v35  ;;  %v184_v46 = vadd.f32 %v178_v27, %v91_v36 }
  0xe2   :  { %v1301_v45 = vsel %vm90_vm4, %v121_v25, %v123_v40 }
  0xe3   :  { %v960_v47 = vmul.f32 -1.442695, %v184_v46 }
  0xe5   :  { %218 = vrot.lane.b32.xlu0 %v126_v8, %s1184_s11  ;;  %1109 = vpow2.f32 %v960_v47 }
  0xef   :  { %v1110_v48 = vpop.eup %1109 }
  0xf0   :  { %v188_v49 = vadd.f32 1.0, %v1110_v48 }
  0xf2   :  { %1111 = vrcp.f32 %v188_v49 }
  0xfc   :  { %v1112_v50 = vpop.eup %1111 }
  0xfd   :  { %v211_v57 = vsub.f32 1.0, %v1112_v50 }
 0x153   :  { %v202_v51 = vpop.permute.xlu0 %201 }
 0x154   :  { %v204_v52 = vmul.f32 %v1112_v50, %v202_v51 }
 0x156   :  { %206 = vrot.lane.b32.xlu1 %v204_v52, %s1183_s0 }
 0x157   :  { %v219_v56 = vpop.permute.xlu0 %218 }
 0x158   :  { %v221_v59 = vmul.f32 %v1112_v50, %v219_v56 }
 0x1c8   :  { %v207_v53 = vpop.permute.xlu1 %206 }
 0x1c9   :  { %v209_v54 = vadd.f32 %v207_v53, %v91_v36 }
 0x1cb   :  { %1113 = vtanh.f32 %v209_v54 }
 0x1d5   :  { %v1114_v55 = vpop.eup %1113 }
 0x1d6   :  { %213 = vrot.lane.b32.xlu1 %v1114_v55, %s1185_s12 }
 0x248   :  { %v214_v58 = vpop.permute.xlu1 %213 }
 0x249   :  { %v216_v60 = vmul.f32 %v214_v58, %v211_v57 }
 0x24b   :  { %v1305_v61 = vadd.f32 %v221_v59, %v216_v60 }
 0x24d   :  { %v223_v62 = vpack.c.bf16 %v1305_v61, %v1305_v61 }
 0x24f   :  { %225 = vrot.lane.b32.xlu1 %v223_v62, %s1185_s12 }
 0x2c1   :  { %v226_v63 = vpop.permute.xlu1 %225 }
 0x2c2   :  { %1033 = vmatmul.mubr.msk.bf16.vlgmr.msra.gmra.mrb[4].mxu0 %vm140_vm3, %v226_v63 }
 0x2c3   :  { %1045 = vmatpush3.bf16.msra.mxu0 %v1231_v3  ;;  %1048 = vmatprep.mubr.msk.bf16.mxu0 %vm1182_vm1, %v1181_v1 }
 0x2c4   :  { %1046 = vmatprep.subr.bf16.mxu0 %v1181_v1 }
 0x2c7   :  { %1047 = vmatpush3.bf16.msra.mxu0 %v1245_v7 }
 0x2c8   :  { %1060 = vmatprep.subr.bf16.mxu0 %v1181_v1 }
 0x395   :  { %v264_v0 = vpop.f32.mrb[4].mxu0 }
 0x396   :  { %v277_v2 = vadd.f32 %v264_v0, %v1277_v17  ;;  %v1034_v4 = vpop.f32.mrb[5].mxu0  ;;  %v270_v8 = vadd.f32 %v264_v0, %v1280_v28 }
 0x397   :  { %v267_v5 = vpop.f32.mrb[6].mxu0 }
 0x398   :  { %279 = vrot.lane.b32.xlu0 %v277_v2, %s1183_s0  ;;  %v1035_v6 = vpop.f32.mrb[7].mxu0  ;;  %v963_v9 = vmul.f32 -1.442695, %v270_v8 }
 0x39a   :  { %1115 = vpow2.f32 %v963_v9 }
 0x3a4   :  { %v1116_v10 = vpop.eup %1115 }
 0x3a5   :  { %v274_v11 = vadd.f32 1.0, %v1116_v10 }
 0x3a7   :  { %1117 = vrcp.f32 %v274_v11 }
 0x3b1   :  { %v1118_v12 = vpop.eup %1117 }
 0x3b2   :  { %v289_v19 = vsub.f32 1.0, %v1118_v12  ;;  %v295_v21 = vmul.f32 %v1118_v12, %v1305_v61 }
 0x40a   :  { %v280_v13 = vpop.permute.xlu0 %279 }
 0x40b   :  { %v282_v14 = vmul.f32 %v1118_v12, %v280_v13 }
 0x40d   :  { %284 = vrot.lane.b32.xlu1 %v282_v14, %s1183_s0 }
 0x47f   :  { %v285_v15 = vpop.permute.xlu1 %284 }
 0x480   :  { %v287_v16 = vadd.f32 %v285_v15, %v1280_v28 }
 0x482   :  { %1119 = vtanh.f32 %v287_v16 }
 0x48c   :  { %v1120_v18 = vpop.eup %1119 }
 0x48d   :  { %291 = vrot.lane.b32.xlu0 %v1120_v18, %s1185_s12 }
 0x4ff   :  { %v292_v20 = vpop.permute.xlu0 %291 }
 0x500   :  { %v294_v22 = vmul.f32 %v292_v20, %v289_v19 }
 0x502   :  { %v1324_v23 = vadd.f32 %v295_v21, %v294_v22 }
 0x504   :  { %v297_v24 = vpack.c.bf16 %v1324_v23, %v1324_v23 }
 0x506   :  { %299 = vrot.lane.b32.xlu1 %v297_v24, %s1185_s12 }
 0x578   :  { %v300_v25 = vpop.permute.xlu1 %299 }
 0x579   :  { %1041 = vmatmul.mubr.msk.bf16.vlgmr.msra.gmra.mrb[4].mxu1 %vm140_vm3, %v300_v25 }
 0x57a   :  { %1053 = vmatpush3.bf16.msra.mxu1 %v1231_v3  ;;  %1056 = vmatprep.mubr.msk.bf16.mxu1 %vm1182_vm1, %v1181_v1 }
 0x57b   :  { %1054 = vmatprep.subr.bf16.mxu1 %v1181_v1 }
 0x57e   :  { %1055 = vmatpush3.bf16.msra.mxu1 %v1245_v7 }
 0x57f   :  { %1068 = vmatprep.subr.bf16.mxu1 %v1181_v1 }
 0x64c   :  { %v338_v26 = vpop.f32.mrb[4].mxu1 }
 0x64d   :  { %v351_v27 = vadd.f32 %v338_v26, %v1277_v17  ;;  %v1042_v28 = vpop.f32.mrb[5].mxu1  ;;  %v344_v31 = vadd.f32 %v338_v26, %v1285_v38 }
 0x64e   :  { %v341_v29 = vpop.f32.mrb[6].mxu1 }
 0x64f   :  { %353 = vrot.lane.b32.xlu0 %v351_v27, %s1183_s0  ;;  %v1043_v30 = vpop.f32.mrb[7].mxu1  ;;  %v965_v32 = vmul.f32 -1.442695, %v344_v31 }
 0x651   :  { %1121 = vpow2.f32 %v965_v32 }
 0x65b   :  { %v1122_v33 = vpop.eup %1121 }
 0x65c   :  { %v348_v34 = vadd.f32 1.0, %v1122_v33 }
 0x65e   :  { %1123 = vrcp.f32 %v348_v34 }
 0x668   :  { %v1124_v35 = vpop.eup %1123 }
 0x669   :  { %v363_v47 = vsub.f32 1.0, %v1124_v35  ;;  %v369_v49 = vmul.f32 %v1124_v35, %v1324_v23 }
 0x6c1   :  { %v354_v36 = vpop.permute.xlu0 %353 }
 0x6c2   :  { %v356_v37 = vmul.f32 %v1124_v35, %v354_v36 }
 0x6c4   :  { %358 = vrot.lane.b32.xlu1 %v356_v37, %s1183_s0 }
 0x736   :  { %v359_v40 = vpop.permute.xlu1 %358 }
 0x737   :  { %v361_v41 = vadd.f32 %v359_v40, %v1285_v38 }
 0x739   :  { %1125 = vtanh.f32 %v361_v41 }
 0x743   :  { %v1126_v46 = vpop.eup %1125 }
 0x744   :  { %365 = vrot.lane.b32.xlu0 %v1126_v46, %s1185_s12 }
 0x7b6   :  { %v366_v48 = vpop.permute.xlu0 %365 }
 0x7b7   :  { %v368_v50 = vmul.f32 %v366_v48, %v363_v47 }
 0x7b9   :  { %v1343_v51 = vadd.f32 %v369_v49, %v368_v50 }
 0x7bb   :  { %v371_v52 = vpack.c.bf16 %v1343_v51, %v1343_v51 }
 0x7bd   :  { %373 = vrot.lane.b32.xlu1 %v371_v52, %s1185_s12 }
 0x82f   :  { %v374_v53 = vpop.permute.xlu1 %373 }
 0x830   :  { %1049 = vmatmul.mubr.msk.bf16.vlgmr.msra.gmra.mrb[8].mxu0 %vm140_vm3, %v374_v53 }
 0x831   :  { %1061 = vmatpush3.bf16.msra.mxu0 %v1231_v3  ;;  %1064 = vmatprep.mubr.msk.bf16.mxu0 %vm1182_vm1, %v1181_v1 }
 0x832   :  { %1062 = vmatprep.subr.bf16.mxu0 %v1181_v1 }
 0x835   :  { %1063 = vmatpush3.bf16.msra.mxu0 %v1245_v7 }
 0x836   :  { %1076 = vmatprep.subr.bf16.mxu0 %v1181_v1 }
 0x903   :  { %v412_v38 = vpop.f32.mrb[8].mxu0 }
 0x904   :  { %v425_v54 = vadd.f32 %v412_v38, %v1277_v17  ;;  %v1050_v55 = vpop.f32.mrb[9].mxu0  ;;  %v418_v58 = vadd.f32 %v412_v38, %v1288_v39 }
 0x905   :  { %v415_v56 = vpop.f32.mrb[10].mxu0 }
 0x906   :  { %427 = vrot.lane.b32.xlu0 %v425_v54, %s1183_s0  ;;  %v1051_v57 = vpop.f32.mrb[11].mxu0  ;;  %v967_v59 = vmul.f32 -1.442695, %v418_v58 }
 0x908   :  { %1127 = vpow2.f32 %v967_v59 }
 0x912   :  { %v1128_v60 = vpop.eup %1127 }
 0x913   :  { %v422_v62 = vadd.f32 1.0, %v1128_v60 }
 0x915   :  { %1129 = vrcp.f32 %v422_v62 }
 0x91f   :  { %v1130_v63 = vpop.eup %1129 }
 0x920   :  { %v437_v8 = vsub.f32 1.0, %v1130_v63  ;;  %v443_v10 = vmul.f32 %v1130_v63, %v1343_v51 }
 0x978   :  { %v428_v0 = vpop.permute.xlu0 %427 }
 0x979   :  { %v430_v2 = vmul.f32 %v1130_v63, %v428_v0 }
 0x97b   :  { %432 = vrot.lane.b32.xlu1 %v430_v2, %s1183_s0 }
 0x9ed   :  { %v433_v4 = vpop.permute.xlu1 %432 }
 0x9ee   :  { %v435_v5 = vadd.f32 %v433_v4, %v1288_v39 }
 0x9f0   :  { %1131 = vtanh.f32 %v435_v5 }
 0x9fa   :  { %v1132_v6 = vpop.eup %1131 }
 0x9fb   :  { %439 = vrot.lane.b32.xlu0 %v1132_v6, %s1185_s12 }
 0xa6d   :  { %v440_v9 = vpop.permute.xlu0 %439 }
 0xa6e   :  { %v442_v11 = vmul.f32 %v440_v9, %v437_v8 }
 0xa70   :  { %v1362_v12 = vadd.f32 %v443_v10, %v442_v11 }
 0xa72   :  { %v445_v13 = vpack.c.bf16 %v1362_v12, %v1362_v12 }
 0xa74   :  { %447 = vrot.lane.b32.xlu1 %v445_v13, %s1185_s12 }
 0xae6   :  { %v448_v14 = vpop.permute.xlu1 %447 }
 0xae7   :  { %1057 = vmatmul.mubr.msk.bf16.vlgmr.msra.gmra.mrb[8].mxu1 %vm140_vm3, %v448_v14 }
 0xae8   :  { %1069 = vmatpush3.bf16.msra.mxu1 %v1231_v3  ;;  %1072 = vmatprep.mubr.msk.bf16.mxu1 %vm1182_vm1, %v1181_v1 }
 0xae9   :  { %1070 = vmatprep.subr.bf16.mxu1 %v1181_v1 }
 0xaec   :  { %1071 = vmatpush3.bf16.msra.mxu1 %v1245_v7 }
 0xaed   :  { %1084 = vmatprep.subr.bf16.mxu1 %v1181_v1 }
 0xbba   :  { %v486_v39 = vpop.f32.mrb[8].mxu1 }
 0xbbb   :  { %v499_v15 = vadd.f32 %v486_v39, %v1277_v17  ;;  %v1058_v16 = vpop.f32.mrb[9].mxu1  ;;  %v492_v20 = vadd.f32 %v486_v39, %v1292_v42 }
 0xbbc   :  { %v489_v18 = vpop.f32.mrb[10].mxu1 }
 0xbbd   :  { %501 = vrot.lane.b32.xlu0 %v499_v15, %s1183_s0  ;;  %v1059_v19 = vpop.f32.mrb[11].mxu1  ;;  %v969_v21 = vmul.f32 -1.442695, %v492_v20 }
 0xbbf   :  { %1133 = vpow2.f32 %v969_v21 }
 0xbc9   :  { %v1134_v22 = vpop.eup %1133 }
 0xbca   :  { %v496_v24 = vadd.f32 1.0, %v1134_v22 }
 0xbcc   :  { %1135 = vrcp.f32 %v496_v24 }
 0xbd6   :  { %v1136_v25 = vpop.eup %1135 }
 0xbd7   :  { %v511_v31 = vsub.f32 1.0, %v1136_v25  ;;  %v517_v33 = vmul.f32 %v1136_v25, %v1362_v12 }
 0xc2f   :  { %v502_v26 = vpop.permute.xlu0 %501 }
 0xc30   :  { %v504_v27 = vmul.f32 %v1136_v25, %v502_v26 }
 0xc32   :  { %506 = vrot.lane.b32.xlu1 %v504_v27, %s1183_s0 }
 0xca4   :  { %v507_v28 = vpop.permute.xlu1 %506 }
 0xca5   :  { %v509_v29 = vadd.f32 %v507_v28, %v1292_v42 }
 0xca7   :  { %1137 = vtanh.f32 %v509_v29 }
 0xcb1   :  { %v1138_v30 = vpop.eup %1137 }
 0xcb2   :  { %513 = vrot.lane.b32.xlu0 %v1138_v30, %s1185_s12 }
 0xd24   :  { %v514_v32 = vpop.permute.xlu0 %513 }
 0xd25   :  { %v516_v34 = vmul.f32 %v514_v32, %v511_v31 }
 0xd27   :  { %v1381_v35 = vadd.f32 %v517_v33, %v516_v34 }
 0xd29   :  { %v519_v36 = vpack.c.bf16 %v1381_v35, %v1381_v35 }
 0xd2b   :  { %521 = vrot.lane.b32.xlu1 %v519_v36, %s1185_s12 }
 0xd9d   :  { %v522_v37 = vpop.permute.xlu1 %521 }
 0xd9e   :  { %1065 = vmatmul.mubr.msk.bf16.vlgmr.msra.gmra.mrb[12].mxu0 %vm140_vm3, %v522_v37 }
 0xd9f   :  { %1077 = vmatpush3.bf16.msra.mxu0 %v1231_v3  ;;  %1080 = vmatprep.mubr.msk.bf16.mxu0 %vm1182_vm1, %v1181_v1 }
 0xda0   :  { %1078 = vmatprep.subr.bf16.mxu0 %v1181_v1 }
 0xda3   :  { %1079 = vmatpush3.bf16.msra.mxu0 %v1245_v7 }
 0xda4   :  { %1092 = vmatprep.subr.bf16.mxu0 %v1181_v1 }
 0xe71   :  { %v560_v42 = vpop.f32.mrb[12].mxu0 }
 0xe72   :  { %v573_v40 = vadd.f32 %v560_v42, %v1277_v17  ;;  %v1066_v41 = vpop.f32.mrb[13].mxu0  ;;  %v566_v48 = vadd.f32 %v560_v42, %v1295_v43 }
 0xe73   :  { %v563_v46 = vpop.f32.mrb[14].mxu0 }
 0xe74   :  { %575 = vrot.lane.b32.xlu0 %v573_v40, %s1183_s0  ;;  %v1067_v47 = vpop.f32.mrb[15].mxu0  ;;  %v971_v3 = vmul.f32 -1.442695, %v566_v48  ;;  %v1106_v40 = vld [vmem:[%s1492_s3] sm:$0xff]   ;;  %v1107_v46 = vld [vmem:[%s1492_s3 + $0x8] sm:$0xff]   ;;  %v751_v48 = vrot.slane %v1343_v51, 6 }
 0xe75   :  { %v748_v47 = vrot.slane %v1324_v23, 7 }
 0xe76   :  { %1139 = vpow2.f32 %v971_v3 }
 0xe80   :  { %v1140_v49 = vpop.eup %1139 }
 0xe81   :  { %v570_v50 = vadd.f32 1.0, %v1140_v49  ;;  %v770_v49 = vrot.slane %v1343_v51, 7 }
 0xe83   :  { %1141 = vrcp.f32 %v570_v50  ;;  %v754_v50 = vrot.slane %v1362_v12, 5 }
 0xe8d   :  { %v1142_v52 = vpop.eup %1141 }
 0xe8e   :  { %v585_v56 = vsub.f32 1.0, %v1142_v52  ;;  %v591_v58 = vmul.f32 %v1142_v52, %v1381_v35 }
 0xee6   :  { %v576_v53 = vpop.permute.xlu0 %575 }
 0xee7   :  { %v578_v7 = vmul.f32 %v1142_v52, %v576_v53  ;;  %v772_v52 = vrot.slane %v1362_v12, 6 }
 0xee9   :  { %580 = vrot.lane.b32.xlu1 %v578_v7, %s1183_s0 }
 0xf5b   :  { %v581_v38 = vpop.permute.xlu1 %580 }
 0xf5c   :  { %v583_v54 = vadd.f32 %v581_v38, %v1295_v43  ;;  %v757_v38 = vrot.slane %v1381_v35, 4 }
 0xf5e   :  { %1143 = vtanh.f32 %v583_v54  ;;  %v774_v54 = vrot.slane %v1381_v35, 5 }
 0xf68   :  { %v1144_v55 = vpop.eup %1143 }
 0xf69   :  { %587 = vrot.lane.b32.xlu0 %v1144_v55, %s1185_s12 }
 0xfdb   :  { %v588_v57 = vpop.permute.xlu0 %587 }
 0xfdc   :  { %v590_v59 = vmul.f32 %v588_v57, %v585_v56 }
 0xfde   :  { %v1400_v60 = vadd.f32 %v591_v58, %v590_v59 }
 0xfe0   :  { %v593_v62 = vpack.c.bf16 %v1400_v60, %v1400_v60  ;;  %v776_v51 = vrot.slane %v1400_v60, 4 }
 0xfe2   :  { %595 = vrot.lane.b32.xlu1 %v593_v62, %s1185_s12 }
0x1054   :  { %v596_v63 = vpop.permute.xlu1 %595 }
0x1055   :  { %1073 = vmatmul.mubr.msk.bf16.vlgmr.msra.gmra.mrb[12].mxu1 %vm140_vm3, %v596_v63 }
0x1056   :  { %1088 = vmatprep.mubr.msk.bf16.mxu1 %vm1182_vm1, %v1181_v1  ;;  %1085 = vmatpush3.bf16.msra.mxu1 %v1106_v40 }
0x1057   :  { %1086 = vmatprep.subr.bf16.mxu1 %v1181_v1 }
0x105a   :  { %1087 = vmatpush3.bf16.msra.mxu1 %v1107_v46 }
0x1128   :  { %v634_v43 = vpop.f32.mrb[12].mxu1 }
0x1129   :  { %v647_v0 = vadd.f32 %v634_v43, %v1277_v17  ;;  %v1074_v2 = vpop.f32.mrb[13].mxu1  ;;  %v640_v6 = vadd.f32 %v634_v43, %v1298_v44 }
0x112a   :  { %v637_v4 = vpop.f32.mrb[14].mxu1 }
0x112b   :  { %649 = vrot.lane.b32.xlu0 %v647_v0, %s1183_s0  ;;  %v1075_v5 = vpop.f32.mrb[15].mxu1  ;;  %v973_v8 = vmul.f32 -1.442695, %v640_v6 }
0x112d   :  { %1145 = vpow2.f32 %v973_v8 }
0x1137   :  { %v1146_v9 = vpop.eup %1145 }
0x1138   :  { %v644_v10 = vadd.f32 1.0, %v1146_v9 }
0x113a   :  { %1147 = vrcp.f32 %v644_v10 }
0x1144   :  { %v1148_v11 = vpop.eup %1147 }
0x1145   :  { %v659_v18 = vsub.f32 1.0, %v1148_v11  ;;  %v665_v20 = vmul.f32 %v1148_v11, %v1400_v60 }
0x119d   :  { %v650_v13 = vpop.permute.xlu0 %649 }
0x119e   :  { %v652_v14 = vmul.f32 %v1148_v11, %v650_v13 }
0x11a0   :  { %654 = vrot.lane.b32.xlu1 %v652_v14, %s1183_s0  ;;  %v1108_v14 = vld [vmem:[%s1492_s3 + $0x10] sm:$0xff]   ;;  %s1186_s3 = smov [#allocation2]  }
0x11a1   :  { %s945_s21 = sshll.u32 %s1186_s3, 4  ;;  %s946_s21 = int_to_ptr.vmem [resolvable:$true] %s945_s21 }
0x11a2   :  { %s1157_s22 = scalar_lea.vmem %s946_s21, 32  ;;  %p1162_p1 = scmp.lt.s32.totalorder %s946_s21, %s946_s21 }
0x11a3   :  { %p1158_p0 = scmp.ne.s32.totalorder %s946_s21, %s1157_s22  ;;  %p1163_p2 = scmp.lt.s32.totalorder %s1157_s22, %s1157_s22 }
0x11a5   :  { %p1164_p3 = por %p1163_p2, %p1162_p1 }
0x11a7   :  { %p1165_p4 = pnand %p1164_p3, %p1158_p0 }
0x1212   :  { %v655_v39 = vpop.permute.xlu1 %654 }
0x1213   :  { %v657_v15 = vadd.f32 %v655_v39, %v1298_v44  ;;  %v976_v39 = vld [vmem:[%s1493_s4 + $0x2] ss:$0 sm:$0xff] }
0x1215   :  { %1149 = vtanh.f32 %v657_v15 }
0x121f   :  { %v1150_v16 = vpop.eup %1149 }
0x1220   :  { %661 = vrot.lane.b32.xlu0 %v1150_v16, %s1185_s12 }
0x1292   :  { %v662_v19 = vpop.permute.xlu0 %661 }
0x1293   :  { %v664_v21 = vmul.f32 %v662_v19, %v659_v18 }
0x1295   :  { %v1415_v22 = vadd.f32 %v665_v20, %v664_v21 }
0x1297   :  { %v667_v24 = vpack.c.bf16 %v1415_v22, %v1415_v22  ;;  %v763_v12 = vrot.slane %v1415_v22, 2  ;;  %v778_v58 = vrot.slane %v1415_v22, 3 }
0x1299   :  { %669 = vrot.lane.b32.xlu1 %v667_v24, %s1185_s12 }
0x130b   :  { %v670_v25 = vpop.permute.xlu1 %669 }
0x130c   :  { %1081 = vmatmul.mubr.msk.bf16.vlgmr.msra.gmra.mrb[16].mxu0 %vm140_vm3, %v670_v25 }
0x130d   :  { %1094 = vmatprep.mubr.msk.bf16.mxu0 %vm1182_vm1, %v1181_v1  ;;  %v782_v1 = vsel %vm90_vm4, %v1305_v61, %v748_v47  ;;  %1093 = vmatpush3.bf16.msra.mxu0 %v1108_v14 }
0x130e   :  { %v784_v7 = vsel %vm783_vm5, %v782_v1, %v751_v48 }
0x130f   :  { %v786_v62 = vsel %vm785_vm6, %v784_v7, %v754_v50 }
0x1310   :  { %v787_v63 = vsel %vm42_vm0, %v786_v62, %v757_v38 }
0x13df   :  { %v708_v44 = vpop.f32.mrb[16].mxu0 }
0x13e0   :  { %v721_v26 = vadd.f32 %v708_v44, %v1277_v17  ;;  %v1082_v27 = vpop.f32.mrb[17].mxu0  ;;  %v714_v30 = vadd.f32 %v708_v44, %v1301_v45 }
0x13e1   :  { %v711_v28 = vpop.f32.mrb[18].mxu0 }
0x13e2   :  { %723 = vrot.lane.b32.xlu0 %v721_v26, %s1183_s0  ;;  %v1083_v29 = vpop.f32.mrb[19].mxu0  ;;  %v975_v31 = vmul.f32 -1.442695, %v714_v30 }
0x13e4   :  { %1151 = vpow2.f32 %v975_v31 }
0x13ee   :  { %v1152_v32 = vpop.eup %1151 }
0x13ef   :  { %v718_v33 = vadd.f32 1.0, %v1152_v32 }
0x13f1   :  { %1153 = vrcp.f32 %v718_v33 }
0x13fb   :  { %v1154_v34 = vpop.eup %1153 }
0x13fc   :  { %v733_v53 = vsub.f32 1.0, %v1154_v34  ;;  %v739_v56 = vmul.f32 %v1154_v34, %v1415_v22 }
0x1454   :  { %v724_v36 = vpop.permute.xlu0 %723 }
0x1455   :  { %v726_v37 = vmul.f32 %v1154_v34, %v724_v36 }
0x1457   :  { %728 = vrot.lane.b32.xlu1 %v726_v37, %s1183_s0 }
0x14c9   :  { %v729_v42 = vpop.permute.xlu1 %728 }
0x14ca   :  { %v731_v17 = vadd.f32 %v729_v42, %v1301_v45  ;;  %v768_v45 = vrot.slane %v1305_v61, 1 }
0x14cc   :  { %1155 = vtanh.f32 %v731_v17  ;;  %v794_v3 = vsel %vm90_vm4, %v768_v45, %v1324_v23  ;;  %v760_v23 = vrot.slane %v1400_v60, 3 }
0x14cd   :  { %v795_v57 = vsel %vm783_vm5, %v794_v3, %v770_v49 }
0x14ce   :  { %v796_v35 = vsel %vm785_vm6, %v795_v57, %v772_v52  ;;  %v789_v2 = vsel %vm788_vm7, %v787_v63, %v760_v23 }
0x14cf   :  { %v797_v43 = vsel %vm42_vm0, %v796_v35, %v774_v54  ;;  %v791_v5 = vsel %vm790_vm8, %v789_v2, %v763_v12 }
0x14d0   :  { %v798_v4 = vsel %vm788_vm7, %v797_v43, %v776_v51 }
0x14d1   :  { %v799_v6 = vsel %vm790_vm8, %v798_v4, %v778_v58 }
0x14d6   :  { %v1156_v41 = vpop.eup %1155 }
0x14d7   :  { %735 = vrot.lane.b32.xlu0 %v1156_v41, %s1185_s12 }
0x1549   :  { %v736_v55 = vpop.permute.xlu0 %735 }
0x154a   :  { %v738_v61 = vmul.f32 %v736_v55, %v733_v53 }
0x154c   :  { %v740_v59 = vadd.f32 %v739_v56, %v738_v61 }
0x154e   :  { %v765_v60 = vrot.slane %v740_v59, 1  ;;  %v780_v0 = vrot.slane %v740_v59, 2  ;;  %742 = vrot.lane.b32.xlu0 %v740_v59, %s1185_s12 }
0x1550   :  { %v793_v8 = vsel %vm792_vm9, %v791_v5, %v765_v60  ;;  %v800_v9 = vsel %vm792_vm9, %v799_v6, %v780_v0 }
0x1551   :  { %v809_v10 = vpack.c.bf16 %v800_v9, %v793_v8 }
0x1553   :  { %815 = vrot.lane.b32.xlu1 %v809_v10, %s1185_s12 }
0x15c0   :  { %v743_v11 = vpop.permute.xlu0 %742 }
0x15c1   :  { %746 = vst.msk [vmem:[#allocation2] sm:$0x3] %vm745_vm10, %v743_v11 }
0x15c5   :  { %v816_v13 = vpop.permute.xlu1 %815 }
0x15c6   :  { %1089 = vmatmul.mubr.msk.bf16.vlgmr.msra.gmra.mrb[16].mxu1 %vm140_vm3, %v816_v13 }
0x1699   :  { %v866_v15 = vpop.f32.mrb[16].mxu1 }
0x169a   :  { %v867_v16 = vadd.f32 %v976_v39, %v866_v15  ;;  %v1090_v18 = vpop.f32.mrb[17].mxu1 }
0x169b   :  { %v869_v19 = vpop.f32.mrb[18].mxu1 }
0x169c   :  { %v875_v20 = vmul.f32 0.01, %v867_v16  ;;  %v870_v21 = vadd.f32 %v976_v39, %v869_v19  ;;  %v1091_v22 = vpop.f32.mrb[19].mxu1  ;;  %vm873_vm11 = vcmp.gt.f32.partialorder %v867_v16, 0.0 }
0x169e   :  { %vm874_vm12 = vcmp.gt.f32.partialorder %v870_v21, 0.0  ;;  %v876_v24 = vmul.f32 0.01, %v870_v21  ;;  %v877_v25 = vsel %vm873_vm11, %v867_v16, %v875_v20 }
0x16a0   :  { %v878_v44 = vsel %vm874_vm12, %v870_v21, %v876_v24 }
0x16a1   :  { %v879_v26 = vpack.c.bf16 %v878_v44, %v877_v25 }
0x16a3   :  { %1095 = vmatmul.mubr.msk.bf16.vlgmr.msra.gmra.mrb[20].mxu0 %vm890_vm13, %v879_v26 }
0x16a4   :  { %1168 = shalt.err (!%p1165_p4)
}
0x16a5   :  { %s1169_s25 = scalar_lea.hbm %s1495_s6, 32 }
0x16a6   :  { %p1170_p5 = scmp.ne.s32.totalorder %s1495_s6, %s1169_s25  ;;  %p1173_p6 = scmp.lt.u32.totalorder %s1169_s25, %s1495_s6 }
0x16a8   :  { %p1175_p7 = pnand %p1173_p6, %p1170_p5 }
0x16aa   :  { %1178 = shalt.err (!%p1175_p7)
}
0x16ab   :  { %948 = dma.vmem_to_hbm [thread:$0]  %s946_s21, 32, %s1495_s6, [#allocation3]   ;;  %v980_v27 = vld [vmem:[%s1493_s4 + $0x3] ss:$0 sm:$0xff] }
0x1776   :  { %v928_v28 = vpop.f32.mrb[20].mxu0 }
0x1777   :  { %v929_v29 = vadd.f32 %v980_v27, %v928_v28  ;;  %v1096_v30 = vpop.f32.mrb[21].mxu0 }
0x1778   :  { %v931_v31 = vpop.f32.mrb[22].mxu0 }
0x1779   :  { %935 = vst.msk [vmem:[%s1494_s5] sm:$0xff] %vm38_vm2, %v929_v29  ;;  %v932_v32 = vadd.f32 %v980_v27, %v931_v31  ;;  %v1097_v33 = vpop.f32.mrb[23].mxu0 }
0x177b   :  { %936 = vst.msk [vmem:[%s1494_s5 + $0x8] sm:$0xff] %vm38_vm2, %v932_v32 }
0x177c   :  { %1179 = dma.done.wait [#allocation3], 32  }
0x177d   :  { %1180 = vsyncadd [#allocation3], 4294967264 }
0x177e   :  { %954 = vsyncpa [#allocation3], 1 }

</bundles_post_ra>
